<compile_context>
chip_gen: v7x
topology: tpu7x:2x2x1
jax: 0.10.0
libtpu: 0.0.40
codegen_flags: <defaults>
</compile_context>

<pallas_src>
import functools
import math

import jax
import jax.numpy as jnp
from jax.experimental import pallas as pl
from jax.experimental.pallas import tpu as pltpu

d_k = d_v = 64


def _sdpa_kernel(q_ref, k_ref, v_ref, mask_ref, ctx_ref, attn_ref, *, scale):
    # q_ref: (G, TQ, Dk); k_ref: (G, S, Dk); v_ref: (G, S, Dv)
    # mask_ref: (1 or G, TQ, S) int8 (nonzero => masked position)
    q = q_ref[...] * scale        # fold 1/sqrt(d_k) into the small (G,TQ,Dk) operand
    k = k_ref[...]                # (G, S, Dk)
    v = v_ref[...]                # (G, S, Dv)
    mask = mask_ref[...]          # (1 or G, TQ, S); broadcasts against scores

    # Batched QK^T contracting the last dim of both operands (no explicit .T).
    scores = jnp.einsum("gqd,gkd->gqk", q, k,
                        preferred_element_type=jnp.float32)      # (G, TQ, S) f32
    scores = jnp.where(mask != 0, jnp.float32(-1e9), scores)

    # Softmax over the key axis in f32 (matches nn.Softmax(dim=-1)).
    m = jnp.max(scores, axis=-1, keepdims=True)
    e = jnp.exp(scores - m)
    denom = jnp.sum(e, axis=-1, keepdims=True)                   # (G, TQ, 1)
    attn = e * pl.reciprocal(denom, approx=False)                # exact: tiny operand

    # Single cast pass; reuse it for the A@V matmul when dtypes line up.
    attn_lo = attn.astype(attn_ref.dtype)
    attn_ref[...] = attn_lo
    av = attn_lo if attn_ref.dtype == v.dtype else attn.astype(v.dtype)
    ctx = jnp.einsum("gqk,gkd->gqd", av, v,
                     preferred_element_type=jnp.float32)
    ctx_ref[...] = ctx.astype(ctx_ref.dtype)


def _vmem_capacity_bytes():
    try:
        info = pltpu.get_tpu_info()
        cap = getattr(info, "vmem_capacity_bytes", None)
        if cap:
            return int(cap)
    except Exception:
        pass
    return 64 * 1024 * 1024   # conservative fallback (v7x per-TC VMEM)


def _vmem_bytes(G, TQ, S, Dk, Dv, itemsize, mask_blocks):
    """Double-buffered pipeline blocks + live f32 softmax intermediates."""
    blocks = (
        G * TQ * Dk          # q block
        + G * S * Dk         # k block (resident across q tiles)
        + G * S * Dv         # v block (resident across q tiles)
        + G * TQ * Dv        # ctx out block
        + G * TQ * S         # attn out block
    ) * itemsize
    blocks += mask_blocks * TQ * S               # int8 mask block
    live_f32 = 3 * G * TQ * S * 4                # scores / exp / attn (f32)
    live_lo = G * TQ * S * itemsize              # attn cast staging
    return 2 * blocks + live_f32 + live_lo


def _choose_tiles(BH, S, Dk, Dv, itemsize, mask_shared, budget):
    """Pick (G heads-per-step, TQ query-tile) that fit the VMEM budget."""
    cands = [t for t in (512, 256, 128, 64, 32, 16, 8) if t <= S and S % t == 0]
    if not cands:
        cands = [S]               # full-width tile (small / odd S)
    TQ = cands[-1]
    for t in cands:               # biggest tile that fits (amortizes grid overhead)
        if _vmem_bytes(1, t, S, Dk, Dv, itemsize, 1) <= budget:
            TQ = t
            break
    G = 1
    if S <= 512 and BH > 1:       # tiny per-step work: batch heads per grid step
        for g in range(min(BH, 8), 1, -1):
            mb = 1 if mask_shared else g
            if BH % g == 0 and _vmem_bytes(g, TQ, S, Dk, Dv, itemsize, mb) <= budget:
                G = g
                break
    return G, TQ


def scaled_dot_product_attention(Q, K, V, attn_mask):
    """Q, K: [B, H, S, d_k]; V: [B, H, S, d_v].

    attn_mask: boolean (nonzero => masked), any shape broadcastable to
    [B, H, S, S] -- e.g. [S, S], [1, 1, S, S], or the full [B, H, S, S].
    Broadcastable masks are NOT materialized to the full batch-head extent.
    """
    B, H, S, Dk = Q.shape
    Dv = V.shape[-1]
    BH = B * H

    # ---- mask normalization (avoid materializing broadcast masks) ----
    m = jnp.asarray(attn_mask)
    if m.ndim == 2:
        m = m.reshape(1, S, S)
    elif m.ndim == 3:
        m = m.reshape(1, S, S) if m.shape[0] == 1 else jnp.broadcast_to(m, (BH, S, S))
    elif m.ndim == 4:
        if m.shape[0] * m.shape[1] == 1:
            m = m.reshape(1, S, S)
        else:
            m = jnp.broadcast_to(m, (B, H, S, S)).reshape(BH, S, S)
    else:
        raise ValueError(f"unsupported attn_mask rank: {m.ndim}")
    mask = m.astype(jnp.int8)                    # cheapest HBM/VMEM representation
    mask_shared = mask.shape[0] == 1

    # Keep the input dtype (bf16 inputs hit the MXU natively); f32 accumulation.
    q = Q.reshape(BH, S, Dk)
    k = K.reshape(BH, S, Dk)
    v = V.reshape(BH, S, Dv)
    out_dtype = Q.dtype
    itemsize = jnp.dtype(out_dtype).itemsize

    # ---- generation-aware tiling / VMEM limit ----
    vmem_cap = _vmem_capacity_bytes()
    budget = int(vmem_cap * 3 // 4)              # ~96 MiB v5e/v6e, ~48 MiB v7x
    G, TQ = _choose_tiles(BH, S, Dk, Dv, itemsize, mask_shared, budget)
    vmem_limit = budget

    mask_g = 1 if mask_shared else G
    if mask_shared:
        mask_spec = pl.BlockSpec((1, TQ, S), lambda b, qi: (0, qi, 0))
    else:
        mask_spec = pl.BlockSpec((mask_g, TQ, S), lambda b, qi: (b, qi, 0))

    kernel = functools.partial(_sdpa_kernel, scale=1.0 / math.sqrt(d_k))

    ctx, attn = pl.pallas_call(
        kernel,
        out_shape=(
            jax.ShapeDtypeStruct((BH, S, Dv), out_dtype),
            jax.ShapeDtypeStruct((BH, S, S), out_dtype),
        ),
        grid_spec=pltpu.PrefetchScalarGridSpec(
            num_scalar_prefetch=0,
            grid=(BH // G, S // TQ),
            in_specs=[
                pl.BlockSpec((G, TQ, Dk), lambda b, qi: (b, qi, 0)),
                pl.BlockSpec((G, S, Dk), lambda b, qi: (b, 0, 0)),   # K resident over q tiles
                pl.BlockSpec((G, S, Dv), lambda b, qi: (b, 0, 0)),   # V resident over q tiles
                mask_spec,
            ],
            out_specs=[
                pl.BlockSpec((G, TQ, Dv), lambda b, qi: (b, qi, 0)),
                pl.BlockSpec((G, TQ, S), lambda b, qi: (b, qi, 0)),
            ],
        ),
        compiler_params=pltpu.CompilerParams(
            # Shard the batch-head axis across TensorCores; keep the q-tile
            # loop (K/V residency + sequential attn writeback) whole per core.
            dimension_semantics=("parallel", "arbitrary"),
            vmem_limit_bytes=vmem_limit,
        ),
    )(q, k, v, mask)

    context = ctx.reshape(B, H, S, Dv)
    attn = attn.reshape(B, H, S, S)
    return context, attn


def _reference(Q, K, V, attn_mask):
    scores = jnp.einsum("bhqd,bhkd->bhqk", Q, K) / math.sqrt(d_k)
    scores = jnp.where(attn_mask, -1e9, scores)
    attn = jax.nn.softmax(scores, axis=-1)
    context = jnp.einsum("bhqk,bhkd->bhqd", attn, V)
    return context, attn


if __name__ == "__main__":
    key = jax.random.PRNGKey(0)
    B, H, S = 2, 2, 8
    kq, kk, kv, km = jax.random.split(key, 4)

    Q = jax.random.normal(kq, (B, H, S, d_k), dtype=jnp.float32)
    K = jax.random.normal(kk, (B, H, S, d_k), dtype=jnp.float32)
    V = jax.random.normal(kv, (B, H, S, d_v), dtype=jnp.float32)

    # 1) Shared (broadcastable) causal mask -- exercises the no-broadcast path.
    causal = jnp.triu(jnp.ones((S, S), dtype=bool), k=1)[None, None]   # (1,1,S,S)
    ctx, attn = scaled_dot_product_attention(Q, K, V, causal)
    jax.block_until_ready(ctx)
    jax.block_until_ready(attn)
    ctx_r, attn_r = _reference(Q, K, V, jnp.broadcast_to(causal, (B, H, S, S)))
    assert jnp.allclose(ctx, ctx_r, atol=1e-3, rtol=1e-3)
    assert jnp.allclose(attn, attn_r, atol=1e-3, rtol=1e-3)

    # 2) Full per-(batch, head) mask -- exercises the general path.
    rand_mask = jax.random.bernoulli(km, 0.3, (B, H, S, S))
    rand_mask = rand_mask.at[..., 0].set(False)   # avoid fully-masked rows
    ctx2, attn2 = scaled_dot_product_attention(Q, K, V, rand_mask)
    jax.block_until_ready(ctx2)
    jax.block_until_ready(attn2)
    ctx2_r, attn2_r = _reference(Q, K, V, rand_mask)
    assert jnp.allclose(ctx2, ctx2_r, atol=1e-3, rtol=1e-3)
    assert jnp.allclose(attn2, attn2_r, atol=1e-3, rtol=1e-3)

    print("KERNEL_OK")
</pallas_src>

<mosaic_0001>
module attributes {stable_mosaic.version = 11 : i64} {
  func.func @_sdpa_kernel(%arg0: i32, %arg1: i32, %arg2: memref<4x8x64xf32, #tpu.memory_space<vmem>>, %arg3: memref<4x8x64xf32, #tpu.memory_space<vmem>>, %arg4: memref<4x8x64xf32, #tpu.memory_space<vmem>>, %arg5: memref<1x8x8xi8, #tpu.memory_space<vmem>>, %arg6: memref<4x8x64xf32, #tpu.memory_space<vmem>>, %arg7: memref<4x8x8xf32, #tpu.memory_space<vmem>>) attributes {dimension_semantics = [#tpu.dimension_semantics<parallel>, #tpu.dimension_semantics<arbitrary>], iteration_bounds = array<i64: 1, 1>, scalar_prefetch = 0 : i64, scratch_operands = 0 : i64, tpu.core_type = #tpu.core_type<tc>, window_params = [{transform_indices = @transform_0, window_bounds = array<i64: 4, 8, 64>}, {transform_indices = @transform_1, window_bounds = array<i64: 4, 8, 64>}, {transform_indices = @transform_2, window_bounds = array<i64: 4, 8, 64>}, {transform_indices = @transform_3, window_bounds = array<i64: 1, 8, 8>}, {transform_indices = @transform_4, window_bounds = array<i64: 4, 8, 64>}, {transform_indices = @transform_5, window_bounds = array<i64: 4, 8, 8>}]} {
    %c0 = arith.constant 0 : index
    %c0_0 = arith.constant 0 : index
    %c0_1 = arith.constant 0 : index
    %0 = vector.load %arg2[%c0, %c0_0, %c0_1] : memref<4x8x64xf32, #tpu.memory_space<vmem>>, vector<4x8x64xf32>
    %cst = arith.constant 1.250000e-01 : f32
    %1 = vector.broadcast %cst : f32 to vector<4x8x64xf32>
    %2 = arith.mulf %0, %1 : vector<4x8x64xf32>
    %c0_2 = arith.constant 0 : index
    %c0_3 = arith.constant 0 : index
    %c0_4 = arith.constant 0 : index
    %3 = vector.load %arg3[%c0_2, %c0_3, %c0_4] : memref<4x8x64xf32, #tpu.memory_space<vmem>>, vector<4x8x64xf32>
    %c0_5 = arith.constant 0 : index
    %c0_6 = arith.constant 0 : index
    %c0_7 = arith.constant 0 : index
    %4 = vector.load %arg4[%c0_5, %c0_6, %c0_7] : memref<4x8x64xf32, #tpu.memory_space<vmem>>, vector<4x8x64xf32>
    %c0_8 = arith.constant 0 : index
    %c0_9 = arith.constant 0 : index
    %c0_10 = arith.constant 0 : index
    %5 = vector.load %arg5[%c0_8, %c0_9, %c0_10] : memref<1x8x8xi8, #tpu.memory_space<vmem>>, vector<1x8x8xi8>
    "tpu.trace_start"() <{level = 10 : i32, message = "gqd,gkd->gqk"}> : () -> ()
    %cst_11 = arith.constant dense<0.000000e+00> : vector<4x8x8xf32>
    %6 = tpu.matmul %2, %3, %cst_11 {dimension_numbers = #tpu.dot_dimension_numbers<[2], [2], [1], [1], [0, 0, 0, 1, 1, 1], [0], [0]>} : vector<4x8x64xf32>, vector<4x8x64xf32>, vector<4x8x8xf32> -> vector<4x8x8xf32>
    %c0_i8 = arith.constant 0 : i8
    "tpu.trace_stop"() : () -> ()
    %7 = vector.broadcast %c0_i8 : i8 to vector<1x8x8xi8>
    %8 = arith.cmpi ne, %5, %7 : vector<1x8x8xi8>
    %cst_12 = arith.constant -1.000000e+09 : f32
    %9 = vector.shape_cast %8 : vector<1x8x8xi1> to vector<1x8x8xi1>
    %10 = vector.broadcast %9 : vector<1x8x8xi1> to vector<4x8x8xi1>
    %11 = vector.broadcast %cst_12 : f32 to vector<4x8x8xf32>
    %12 = arith.select %10, %11, %6 : vector<4x8x8xi1>, vector<4x8x8xf32>
    %cst_13 = arith.constant dense<0xFF800000> : vector<4x8xf32>
    %13 = vector.multi_reduction <maximumf>, %12, %cst_13 [2] : vector<4x8x8xf32> to vector<4x8xf32>
    %14 = vector.shape_cast %13 : vector<4x8xf32> to vector<4x8x1xf32>
    %15 = vector.broadcast %14 : vector<4x8x1xf32> to vector<4x8x8xf32>
    %16 = arith.subf %12, %15 : vector<4x8x8xf32>
    %17 = math.exp %16 : vector<4x8x8xf32>
    %cst_14 = arith.constant dense<0.000000e+00> : vector<4x8xf32>
    %18 = vector.multi_reduction <add>, %17, %cst_14 [2] : vector<4x8x8xf32> to vector<4x8xf32>
    %19 = vector.shape_cast %18 : vector<4x8xf32> to vector<4x8x1xf32>
    %20 = tpu.reciprocal %19 : vector<4x8x1xf32> -> vector<4x8x1xf32>
    %21 = vector.broadcast %20 : vector<4x8x1xf32> to vector<4x8x8xf32>
    %22 = arith.mulf %17, %21 : vector<4x8x8xf32>
    %c0_15 = arith.constant 0 : index
    %c0_16 = arith.constant 0 : index
    %c0_17 = arith.constant 0 : index
    %23 = vector.load %arg7[%c0_15, %c0_16, %c0_17] : memref<4x8x8xf32, #tpu.memory_space<vmem>>, vector<4x8x8xf32>
    tpu.vector_store %arg7[%c0_15, %c0_16, %c0_17], %22 {strides = array<i32>} : memref<4x8x8xf32, #tpu.memory_space<vmem>>, vector<4x8x8xf32>,
    "tpu.trace_start"() <{level = 10 : i32, message = "gqk,gkd->gqd"}> : () -> ()
    %cst_18 = arith.constant dense<0.000000e+00> : vector<4x8x64xf32>
    %24 = tpu.matmul %22, %4, %cst_18 {dimension_numbers = #tpu.dot_dimension_numbers<[2], [1], [1], [2], [0, 0, 0, 1, 1, 2], [0], [0]>} : vector<4x8x8xf32>, vector<4x8x64xf32>, vector<4x8x64xf32> -> vector<4x8x64xf32>
    "tpu.trace_stop"() : () -> ()
    %c0_19 = arith.constant 0 : index
    %c0_20 = arith.constant 0 : index
    %c0_21 = arith.constant 0 : index
    %25 = vector.load %arg6[%c0_19, %c0_20, %c0_21] : memref<4x8x64xf32, #tpu.memory_space<vmem>>, vector<4x8x64xf32>
    tpu.vector_store %arg6[%c0_19, %c0_20, %c0_21], %24 {strides = array<i32>} : memref<4x8x64xf32, #tpu.memory_space<vmem>>, vector<4x8x64xf32>,
    return
  }
  func.func @transform_0(%arg0: i32, %arg1: i32) -> (i32, i32, i32) {
    %c0_i32 = arith.constant 0 : i32
    %c0_i32_0 = arith.constant 0 : i32
    return %arg0, %arg1, %c0_i32 : i32, i32, i32
  }
  func.func @transform_1(%arg0: i32, %arg1: i32) -> (i32, i32, i32) {
    %c0_i32 = arith.constant 0 : i32
    %c0_i32_0 = arith.constant 0 : i32
    %c0_i32_1 = arith.constant 0 : i32
    return %arg0, %c0_i32, %c0_i32_0 : i32, i32, i32
  }
  func.func @transform_2(%arg0: i32, %arg1: i32) -> (i32, i32, i32) {
    %c0_i32 = arith.constant 0 : i32
    %c0_i32_0 = arith.constant 0 : i32
    %c0_i32_1 = arith.constant 0 : i32
    return %arg0, %c0_i32, %c0_i32_0 : i32, i32, i32
  }
  func.func @transform_3(%arg0: i32, %arg1: i32) -> (i32, i32, i32) {
    %c0_i32 = arith.constant 0 : i32
    %c0_i32_0 = arith.constant 0 : i32
    %c0_i32_1 = arith.constant 0 : i32
    return %c0_i32, %arg1, %c0_i32_0 : i32, i32, i32
  }
  func.func @transform_4(%arg0: i32, %arg1: i32) -> (i32, i32, i32) {
    %c0_i32 = arith.constant 0 : i32
    %c0_i32_0 = arith.constant 0 : i32
    return %arg0, %arg1, %c0_i32 : i32, i32, i32
  }
  func.func @transform_5(%arg0: i32, %arg1: i32) -> (i32, i32, i32) {
    %c0_i32 = arith.constant 0 : i32
    %c0_i32_0 = arith.constant 0 : i32
    return %arg0, %arg1, %c0_i32 : i32, i32, i32
  }
}

</mosaic_0001>

<bundles_post_ra>
// kernel: tpu_custom_call.1
= control target key start
LH: loop header
LB: loop body
LE: loop exit
PB: predicated region body
PF: predicated region fallthrough
CT: control target
= control target key end

     0   :  { %11 = vsyncpa [#allocation3], 0  ;;  %s1176_s0 = inlined_call_operand.hbm [shape: f32[4,8,64], index: 0, kind: input, shape index: {}]   ;;  %s1177_s1 = inlined_call_operand.hbm [shape: f32[4,8,64], index: 1, kind: input, shape index: {}]   ;;  %s1178_s2 = inlined_call_operand.hbm [shape: f32[4,8,64], index: 2, kind: input, shape index: {}]   ;;  %s1179_s3 = inlined_call_operand.vmem [shape: s8[1,8,8], index: 3, kind: input, shape index: {}]   ;;  %s1180_s4 = inlined_call_operand.hbm [shape: f32[4,8,64], index: 4, kind: output, shape index: {0}]   ;;  %s1181_s5 = inlined_call_operand.hbm [shape: f32[4,8,8], index: 5, kind: output, shape index: {1}]  }
   0x1   :  { %12 = vsyncpa [#allocation6], 0 }
   0x2   :  { %13 = vsyncpa [#allocation4], 0 }
   0x3   :  { %14 = vsyncpa [#allocation10], 0  ;;  %s987_s18 = smov [#allocation5]   ;;  %s988_s20 = smov [#allocation2]  }
   0x4   :  { %s32_s19 = sshll.u32 %s987_s18, 4  ;;  %s20_s21 = sshll.u32 %s988_s20, 4  ;;  %s33_s19 = int_to_ptr.vmem [resolvable:$true] %s32_s19  ;;  %s1027_s21 = int_to_ptr.vmem [resolvable:$true] %s20_s21 }
   0x5   :  { %s869_s24 = scalar_lea.hbm %s1177_s1, 512 }
   0x6   :  { %p870_p0 = scmp.ne.s32.totalorder %s1177_s1, %s869_s24  ;;  %p873_p1 = scmp.lt.u32.totalorder %s869_s24, %s1177_s1 }
   0x8   :  { %p875_p2 = pnand %p873_p1, %p870_p0 }
   0xa   :  { %878 = shalt.err (!%p875_p2)
}
   0xb   :  { %s879_s29 = scalar_lea.vmem %s33_s19, 512  ;;  %p884_p4 = scmp.lt.s32.totalorder %s33_s19, %s33_s19 }
   0xc   :  { %p880_p3 = scmp.ne.s32.totalorder %s33_s19, %s879_s29  ;;  %p885_p5 = scmp.lt.s32.totalorder %s879_s29, %s879_s29 }
   0xe   :  { %p886_p6 = por %p885_p5, %p884_p4 }
  0x10   :  { %p887_p7 = pnand %p886_p6, %p880_p3 }
  0x12   :  { %890 = shalt.err (!%p887_p7)
}
  0x13   :  { %s989_s30 = smov 128   ;;  %s990_s6 = smov 8  }
  0x14   :  { %38 = dma.hbm_to_vmem [thread:$0]  %s1177_s1, 512, %s33_s19, [#allocation6], %s989_s30, %s989_s30, %s990_s6  }
  0x15   :  { %s891_s11 = scalar_lea.hbm %s1176_s0, 512 }
  0x16   :  { %p892_p8 = scmp.ne.s32.totalorder %s1176_s0, %s891_s11  ;;  %p895_p9 = scmp.lt.u32.totalorder %s891_s11, %s1176_s0 }
  0x18   :  { %p897_p10 = pnand %p895_p9, %p892_p8 }
  0x1a   :  { %900 = shalt.err (!%p897_p10)
}
  0x1b   :  { %s901_s16 = scalar_lea.vmem %s1027_s21, 512  ;;  %p906_p12 = scmp.lt.s32.totalorder %s1027_s21, %s1027_s21 }
  0x1c   :  { %p902_p11 = scmp.ne.s32.totalorder %s1027_s21, %s901_s16  ;;  %p907_p13 = scmp.lt.s32.totalorder %s901_s16, %s901_s16 }
  0x1e   :  { %p908_p0 = por %p907_p13, %p906_p12 }
  0x20   :  { %p909_p1 = pnand %p908_p0, %p902_p11 }
  0x22   :  { %912 = shalt.err (!%p909_p1)
}
  0x23   :  { %26 = dma.hbm_to_vmem [thread:$0]  %s1176_s0, 512, %s1027_s21, [#allocation3], %s989_s30, %s989_s30, %s990_s6  }
  0x24   :  { %s991_s18 = smov [#allocation7]   ;;  %s913_s23 = scalar_lea.hbm %s1178_s2, 512 }
  0x25   :  { %s44_s19 = sshll.u32 %s991_s18, 4  ;;  %p914_p2 = scmp.ne.s32.totalorder %s1178_s2, %s913_s23  ;;  %s45_s19 = int_to_ptr.vmem [resolvable:$true] %s44_s19 }
  0x26   :  { %p917_p3 = scmp.lt.u32.totalorder %s913_s23, %s1178_s2 }
  0x28   :  { %p919_p4 = pnand %p917_p3, %p914_p2 }
  0x2a   :  { %922 = shalt.err (!%p919_p4)
}
  0x2b   :  { %s923_s28 = scalar_lea.vmem %s45_s19, 512  ;;  %p928_p6 = scmp.lt.s32.totalorder %s45_s19, %s45_s19 }
  0x2c   :  { %p924_p5 = scmp.ne.s32.totalorder %s45_s19, %s923_s28  ;;  %p929_p7 = scmp.lt.s32.totalorder %s923_s28, %s923_s28 }
  0x2e   :  { %p930_p8 = por %p929_p7, %p928_p6 }
  0x30   :  { %p931_p9 = pnand %p930_p8, %p924_p5 }
  0x32   :  { %934 = shalt.err (!%p931_p9)
}
  0x33   :  { %50 = dma.hbm_to_vmem [thread:$0]  %s1178_s2, 512, %s45_s19, [#allocation6], %s989_s30, %s989_s30, %s990_s6  }
  0x34   :  { %979 = dma.done.wait [#allocation3], 512  }
  0x35   :  { %980 = vsyncadd [#allocation3], 4294966784 }
  0x36   :  { %981 = dma.done.wait [#allocation6], 1024  }
  0x37   :  { %982 = vsyncadd [#allocation6], 4294966272  ;;  %v992_v0 = vmov 0.0   ;;  %vm993_vm0 = vmmov 0   ;;  %vm81_vm1 = vcmask 523264   ;;  %v72_v1 = vld [vmem:[#allocation5] sm:$0xff] }
  0x38   :  { %803 = vmatprep.subr.mxu0 %v992_v0  ;;  %805 = vmatprep.mubr.msk.f32.mxu0 %vm993_vm0, %v992_v0  ;;  %v64_v2 = vld [vmem:[#allocation2] sm:$0xff]  ;;  %v73_v3 = vld [vmem:[#allocation5 + $0x8] sm:$0xff]  ;;  %v66_v6 = vld [vmem:[#allocation2 + $0x10] sm:$0xff]  ;;  %v994_v14 = vmov 0   ;;  %vm396_vm4 = vcmask 64512  }
  0x39   :  { %808 = vmatprep.subr.mxu1 %v992_v0  ;;  %810 = vmatprep.mubr.msk.f32.mxu1 %vm993_vm0, %v992_v0  ;;  %v68_v4 = vmul.f32 0.125, %v64_v2  ;;  %v65_v5 = vld [vmem:[#allocation2 + $0x8] sm:$0xff]  ;;  %v74_v7 = vld [vmem:[#allocation5 + $0x10] sm:$0xff]  ;;  %v67_v9 = vld [vmem:[#allocation2 + $0x18] sm:$0xff]  ;;  %v70_v11 = vmul.f32 0.125, %v66_v6 }
  0x3a   :  { %804 = vmatpush3.xpose.msk.msra.mxu0 %vm81_vm1, %v72_v1  ;;  %809 = vmatpush3.xpose.msk.msra.mxu1 %vm81_vm1, %v73_v3  ;;  %v69_v8 = vmul.f32 0.125, %v65_v5  ;;  %v75_v10 = vld [vmem:[#allocation5 + $0x18] sm:$0xff]  ;;  %v71_v12 = vmul.f32 0.125, %v67_v9  ;;  %v80_v13 = vld [vmem:[%s1179_s3] sm:$0x3]  ;;  %v77_v55 = vld [vmem:[#allocation7 + $0x8] sm:$0xff] }
  0x3b   :  { %813 = vmatprep.subr.mxu0 %v992_v0  ;;  %818 = vmatprep.subr.mxu1 %v992_v0  ;;  %vm386_vm2 = vnez %v80_v13  ;;  %v76_v54 = vld [vmem:[#allocation7] sm:$0xff]  ;;  %v78_v62 = vld [vmem:[#allocation7 + $0x10] sm:$0xff]  ;;  %v79_v3 = vld [vmem:[#allocation7 + $0x18] sm:$0xff]  ;;  %s995_s3 = smov [#allocation9]  }
  0x3c   :  { %v387_v15 = vsel %vm386_vm2, 16843009, %v994_v14  ;;  %s758_s7 = sshll.u32 %s995_s3, 4  ;;  %s759_s7 = int_to_ptr.vmem [resolvable:$true] %s758_s7 }
  0x3d   :  { %806 = vmatmul.mubr.msk.f32.vlgmr.msra.gmra.mrb[0].mxu0 %vm81_vm1, %v68_v4  ;;  %811 = vmatmul.mubr.msk.f32.vlgmr.msra.gmra.mrb[0].mxu1 %vm81_vm1, %v69_v8  ;;  %v388_v16 = vunpack.c.0.s8 %v387_v15  ;;  %s935_s8 = scalar_lea.vmem %s759_s7, 512  ;;  %p940_p11 = scmp.lt.s32.totalorder %s759_s7, %s759_s7 }
  0x3e   :  { %814 = vmatpush3.xpose.msk.msra.mxu0 %vm81_vm1, %v74_v7  ;;  %815 = vmatprep.mubr.msk.f32.mxu0 %vm993_vm0, %v992_v0  ;;  %p936_p10 = scmp.ne.s32.totalorder %s759_s7, %s935_s8  ;;  %p941_p12 = scmp.lt.s32.totalorder %s935_s8, %s935_s8 }
  0x3f   :  { %819 = vmatpush3.xpose.msk.msra.mxu1 %vm81_vm1, %v75_v10  ;;  %820 = vmatprep.mubr.msk.f32.mxu1 %vm993_vm0, %v992_v0  ;;  %vm1108_vm3 = vcmp.ne.s32.totalorder %v388_v16, 0 }
  0x40   :  { %823 = vmatprep.subr.mxu0 %v992_v0  ;;  %828 = vmatprep.subr.mxu1 %v992_v0  ;;  %p942_p13 = por %p941_p12, %p940_p11 }
  0x41   :  { %816 = vmatmul.mubr.msk.f32.vlgmr.msra.gmra.mrb[2].mxu0 %vm81_vm1, %v70_v11 }
  0x42   :  { %821 = vmatmul.mubr.msk.f32.vlgmr.msra.gmra.mrb[2].mxu1 %vm81_vm1, %v71_v12  ;;  %825 = vmatprep.mubr.msk.f32.mxu0 %vm993_vm0, %v992_v0  ;;  %p943_p0 = pnand %p942_p13, %p936_p10 }
  0x43   :  { %830 = vmatprep.mubr.msk.f32.mxu1 %vm993_vm0, %v992_v0  ;;  %824 = vmatpush3.msra.mxu0 %v76_v54 }
  0x44   :  { %833 = vmatprep.subr.mxu0 %v992_v0  ;;  %829 = vmatpush3.msra.mxu1 %v77_v55 }
  0x45   :  { %838 = vmatprep.subr.mxu1 %v992_v0 }
 0x110   :  { %v154_v18 = vpop.f32.mrb[0].mxu0  ;;  %v230_v19 = vpop.f32.mrb[0].mxu1 }
 0x111   :  { %v392_v20 = vsel %vm1108_vm3, -1e+09, %v154_v18  ;;  %v807_v21 = vpop.f32.mrb[1].mxu0  ;;  %v393_v22 = vsel %vm1108_vm3, -1e+09, %v230_v19  ;;  %v812_v23 = vpop.f32.mrb[1].mxu1 }
 0x112   :  { %v397_v24 = vsel %vm396_vm4, %v392_v20, -inf  ;;  %v400_v26 = vsel %vm396_vm4, %v393_v22, -inf }
 0x113   :  { %398 = vmax.xlane.f32.xlu0 %v397_v24 }
 0x114   :  { %v306_v25 = vpop.f32.mrb[2].mxu0 }
 0x115   :  { %v394_v27 = vsel %vm1108_vm3, -1e+09, %v306_v25  ;;  %v817_v28 = vpop.f32.mrb[3].mxu0  ;;  %v382_v29 = vpop.f32.mrb[2].mxu1 }
 0x116   :  { %v403_v30 = vsel %vm396_vm4, %v394_v27, -inf  ;;  %v395_v31 = vsel %vm1108_vm3, -1e+09, %v382_v29  ;;  %v822_v32 = vpop.f32.mrb[3].mxu1 }
 0x117   :  { %401 = vmax.xlane.f32.xlu0 %v400_v26  ;;  %404 = vmax.xlane.f32.xlu1 %v403_v30  ;;  %v406_v33 = vsel %vm396_vm4, %v395_v31, -inf }
 0x11b   :  { %407 = vmax.xlane.f32.xlu1 %v406_v33 }
 0x1a0   :  { %v399_v34 = vpop.xlane.xlu0 %398 }
 0x1a1   :  { %v409_v35 = vsub.f32 %v392_v20, %v399_v34 }
 0x1a3   :  { %v413_v36 = vmul.f32 1.442695, %v409_v35 }
 0x1a4   :  { %v402_v37 = vpop.xlane.xlu0 %401  ;;  %v405_v38 = vpop.xlane.xlu1 %404 }
 0x1a5   :  { %853 = vpow2.f32 %v413_v36  ;;  %v410_v39 = vsub.f32 %v393_v22, %v402_v37  ;;  %v411_v40 = vsub.f32 %v394_v27, %v405_v38 }
 0x1a7   :  { %v415_v41 = vmul.f32 1.442695, %v410_v39  ;;  %v417_v42 = vmul.f32 1.442695, %v411_v40 }
 0x1a8   :  { %v408_v43 = vpop.xlane.xlu1 %407 }
 0x1a9   :  { %855 = vpow2.f32 %v415_v41  ;;  %v412_v44 = vsub.f32 %v395_v31, %v408_v43 }
 0x1aa   :  { %857 = vpow2.f32 %v417_v42 }
 0x1ab   :  { %v419_v45 = vmul.f32 1.442695, %v412_v44 }
 0x1ad   :  { %859 = vpow2.f32 %v419_v45 }
 0x1af   :  { %v854_v46 = vpop.eup %853 }
 0x1b0   :  { %v421_v47 = vsel %vm396_vm4, %v854_v46, 0.0 }
 0x1b1   :  { %422 = vadd.xlane.f32.xlu0 %v421_v47 }
 0x1b3   :  { %v856_v48 = vpop.eup %855 }
 0x1b4   :  { %v858_v49 = vpop.eup %857  ;;  %v424_v50 = vsel %vm396_vm4, %v856_v48, 0.0 }
 0x1b5   :  { %425 = vadd.xlane.f32.xlu1 %v424_v50  ;;  %v427_v51 = vsel %vm396_vm4, %v858_v49, 0.0 }
 0x1b6   :  { %428 = vadd.xlane.f32.xlu0 %v427_v51 }
 0x1b7   :  { %v860_v52 = vpop.eup %859 }
 0x1b8   :  { %v430_v53 = vsel %vm396_vm4, %v860_v52, 0.0 }
 0x1b9   :  { %431 = vadd.xlane.f32.xlu1 %v430_v53 }
 0x23e   :  { %v423_v56 = vpop.xlane.xlu0 %422 }
 0x23f   :  { %861 = vrcp.f32 %v423_v56 }
 0x242   :  { %v426_v57 = vpop.xlane.xlu1 %425 }
 0x243   :  { %v429_v58 = vpop.xlane.xlu0 %428  ;;  %863 = vrcp.f32 %v426_v57 }
 0x244   :  { %865 = vrcp.f32 %v429_v58 }
 0x246   :  { %v432_v59 = vpop.xlane.xlu1 %431 }
 0x247   :  { %867 = vrcp.f32 %v432_v59 }
 0x249   :  { %v862_v60 = vpop.eup %861 }
 0x24a   :  { %v437_v61 = vmul.f32 %v862_v60, %v854_v46 }
 0x24c   :  { %441 = vst.msk [vmem:[#allocation9] sm:$0xff] %vm396_vm4, %v437_v61  ;;  %826 = vmatmul.mubr.msk.f32.vlgmr.msra.gmra.mrb[4].mxu0 %vm396_vm4, %v437_v61 }
 0x24d   :  { %v864_v63 = vpop.eup %863  ;;  %834 = vmatpush3.msra.mxu0 %v78_v62  ;;  %835 = vmatprep.mubr.msk.f32.mxu0 %vm993_vm0, %v992_v0 }
 0x24e   :  { %v866_v1 = vpop.eup %865  ;;  %v438_v2 = vmul.f32 %v864_v63, %v856_v48 }
 0x24f   :  { %v439_v4 = vmul.f32 %v866_v1, %v858_v49 }
 0x250   :  { %442 = vst.msk [vmem:[#allocation9 + $0x8] sm:$0xff] %vm396_vm4, %v438_v2  ;;  %831 = vmatmul.mubr.msk.f32.vlgmr.msra.gmra.mrb[4].mxu1 %vm396_vm4, %v438_v2 }
 0x251   :  { %v868_v5 = vpop.eup %867  ;;  %443 = vst.msk [vmem:[#allocation9 + $0x10] sm:$0xff] %vm396_vm4, %v439_v4  ;;  %836 = vmatmul.mubr.msk.f32.vlgmr.msra.gmra.mrb[6].mxu0 %vm396_vm4, %v439_v4  ;;  %839 = vmatpush3.msra.mxu1 %v79_v3 }
 0x252   :  { %v440_v6 = vmul.f32 %v868_v5, %v860_v52  ;;  %840 = vmatprep.mubr.msk.f32.mxu1 %vm993_vm0, %v992_v0 }
 0x254   :  { %444 = vst.msk [vmem:[#allocation9 + $0x18] sm:$0xff] %vm396_vm4, %v440_v6  ;;  %841 = vmatmul.mubr.msk.f32.vlgmr.msra.gmra.mrb[6].mxu1 %vm396_vm4, %v440_v6 }
 0x255   :  { %946 = shalt.err (!%p943_p0)
}
 0x256   :  { %s947_s11 = scalar_lea.hbm %s1181_s5, 512 }
 0x257   :  { %p948_p1 = scmp.ne.s32.totalorder %s1181_s5, %s947_s11  ;;  %p951_p2 = scmp.lt.u32.totalorder %s947_s11, %s1181_s5 }
 0x259   :  { %p953_p3 = pnand %p951_p2, %p948_p1 }
 0x25b   :  { %956 = shalt.err (!%p953_p3)
}
 0x25c   :  { %764 = dma.vmem_to_hbm [thread:$0]  %s759_s7, 512, %s1181_s5, [#allocation10], %s989_s30, %s989_s30, %s990_s6  }
 0x25d   :  { %s996_s17 = smov [#allocation8]  }
 0x25e   :  { %s746_s18 = sshll.u32 %s996_s17, 4  ;;  %s747_s18 = int_to_ptr.vmem [resolvable:$true] %s746_s18 }
 0x25f   :  { %s957_s5 = scalar_lea.vmem %s747_s18, 512  ;;  %p962_p5 = scmp.lt.s32.totalorder %s747_s18, %s747_s18 }
 0x260   :  { %p958_p4 = scmp.ne.s32.totalorder %s747_s18, %s957_s5  ;;  %p963_p6 = scmp.lt.s32.totalorder %s957_s5, %s957_s5 }
 0x262   :  { %p964_p7 = por %p963_p6, %p962_p5 }
 0x264   :  { %p965_p8 = pnand %p964_p7, %p958_p4 }
 0x31f   :  { %v514_v0 = vpop.f32.mrb[4].mxu0 }
 0x320   :  { %737 = vst.msk [vmem:[#allocation8] sm:$0xff] %vm81_vm1, %v514_v0  ;;  %v827_v7 = vpop.f32.mrb[5].mxu0 }
 0x323   :  { %v587_v8 = vpop.f32.mrb[4].mxu1 }
 0x324   :  { %738 = vst.msk [vmem:[#allocation8 + $0x8] sm:$0xff] %vm81_vm1, %v587_v8  ;;  %v660_v9 = vpop.f32.mrb[6].mxu0  ;;  %v832_v10 = vpop.f32.mrb[5].mxu1 }
 0x325   :  { %739 = vst.msk [vmem:[#allocation8 + $0x10] sm:$0xff] %vm81_vm1, %v660_v9  ;;  %v837_v11 = vpop.f32.mrb[7].mxu0 }
 0x327   :  { %v733_v12 = vpop.f32.mrb[6].mxu1 }
 0x328   :  { %740 = vst.msk [vmem:[#allocation8 + $0x18] sm:$0xff] %vm81_vm1, %v733_v12  ;;  %v842_v13 = vpop.f32.mrb[7].mxu1 }
 0x329   :  { %968 = shalt.err (!%p965_p8)
}
 0x32a   :  { %s969_s22 = scalar_lea.hbm %s1180_s4, 512 }
 0x32b   :  { %p970_p9 = scmp.ne.s32.totalorder %s1180_s4, %s969_s22  ;;  %p973_p10 = scmp.lt.u32.totalorder %s969_s22, %s1180_s4 }
 0x32d   :  { %p975_p11 = pnand %p973_p10, %p970_p9 }
 0x32f   :  { %978 = shalt.err (!%p975_p11)
}
 0x330   :  { %752 = dma.vmem_to_hbm [thread:$0]  %s747_s18, 512, %s1180_s4, [#allocation4], %s989_s30, %s989_s30, %s990_s6  }
 0x331   :  { %983 = dma.done.wait [#allocation4], 512  }
 0x332   :  { %984 = vsyncadd [#allocation4], 4294966784 }
 0x333   :  { %985 = dma.done.wait [#allocation10], 512  }
 0x334   :  { %986 = vsyncadd [#allocation10], 4294966784 }
 0x335   :  { %771 = vsyncpa [#allocation3], 1 }
 0x336   :  { %772 = vsyncpa [#allocation6], 1 }
 0x337   :  { %773 = vsyncpa [#allocation4], 1 }
 0x338   :  { %774 = vsyncpa [#allocation10], 1 }

</bundles_post_ra>
